<compile_context>
chip_gen: v7x
topology: tpu7x:2x2x1
jax: 0.10.0
libtpu: 0.0.40
codegen_flags: <defaults>
</compile_context>

<pallas_src>
import functools
import math

import jax
import jax.numpy as jnp
from jax.experimental import pallas as pl
from jax.experimental.pallas import tpu as pltpu


def _round_up(x, m):
    return ((x + m - 1) // m) * m


# ---------------------------------------------------------------------------
# Kernel 1: XW = X @ W (row-tiled, computed once, reused by every agg tile)
# ---------------------------------------------------------------------------
def _xw_kernel(x_ref, w_ref, out_ref):
    out_ref[...] = jnp.dot(
        x_ref[...], w_ref[...], preferred_element_type=jnp.float32
    ).astype(out_ref.dtype)


# ---------------------------------------------------------------------------
# Kernel 2: out = PReLU(A_norm @ XW + b), accumulating straight into out_ref
# ---------------------------------------------------------------------------
def _gcn_agg_kernel(a_ref, xw_ref, b_ref, alpha_ref, out_ref, *, tk, xw_resident):
    # grid = (row tiles [parallel], aggregation tiles [arbitrary])
    k = pl.program_id(1)

    @pl.when(k == 0)
    def _init():
        out_ref[...] = jnp.zeros_like(out_ref)

    if xw_resident:
        # Whole XW lives in VMEM (fetched once); take the k-th contraction slice.
        xw = xw_ref[pl.ds(pl.multiple_of(k * tk, tk), tk), :]
    else:
        xw = xw_ref[...]

    out_ref[...] += jnp.dot(a_ref[...], xw, preferred_element_type=jnp.float32)

    @pl.when(k == pl.num_programs(1) - 1)
    def _finalize():
        h = out_ref[...] + b_ref[...]
        alpha = alpha_ref[0, 0]  # PReLU slope from SMEM (scalar path)
        out_ref[...] = jnp.where(h > 0.0, h, alpha * h)


# ---------------------------------------------------------------------------
# Wrapper
# ---------------------------------------------------------------------------
def gcn_text_forward(x, edge_index, weight, bias, alpha, *,
                     tm=1024, tk=2048, agg_dtype=jnp.bfloat16,
                     xw_resident_bytes=4 * 1024 * 1024):
    """x: [N, in_c] f32, edge_index: [2, E] i32, weight: [in_c, out_c] f32,
    bias: [out_c] f32, alpha: scalar f32 -> [N, out_c] f32."""
    N, in_c = x.shape
    out_c = weight.shape[1]

    # ---- tile geometry (decoupled row / contraction padding) ----------------
    n128 = _round_up(N, 128)
    tm = min(tm, n128)
    tk = min(tk, n128)
    n_pad_m = _round_up(N, tm)      # A rows / output rows
    n_pad_k = _round_up(N, tk)      # aggregation (contraction) axis
    c_pad = _round_up(out_c, 128)   # lane-dense output channels

    # ---- glue: dense symmetric-normalized adjacency (GCN norm) --------------
    # PyG gcn_norm uses add_remaining_self_loops: existing self loops are
    # dropped and every node gets exactly one self loop of weight 1.
    src = edge_index[0].astype(jnp.int32)
    dst = edge_index[1].astype(jnp.int32)
    keep_w = (src != dst).astype(jnp.float32)            # zero out existing self loops
    loop = jnp.arange(N, dtype=jnp.int32)
    src_all = jnp.concatenate([src, loop])
    dst_all = jnp.concatenate([dst, loop])
    w_all = jnp.concatenate([keep_w, jnp.ones((N,), jnp.float32)])

    deg = jnp.zeros((N,), jnp.float32).at[dst_all].add(w_all)
    dinv = jnp.where(deg > 0, jax.lax.rsqrt(deg), 0.0)
    vals = w_all * dinv[src_all] * dinv[dst_all]          # computed in f32
    # Scatter straight into the agg_dtype buffer: no separate full-size f32
    # materialization + cast pass (saves one O(N^2) HBM round trip).
    a_norm = (jnp.zeros((n_pad_m, n_pad_k), agg_dtype)
              .at[dst_all, src_all].add(vals.astype(agg_dtype)))
    # TODO(synk): replace the dense [N,N] adjacency with a block-sparse path
    # (PrefetchScalarGridSpec over per-row-tile neighbour-block lists + pl.when
    # to skip empty tiles) so HBM traffic scales with E instead of N^2.

    # ---- padded operands -----------------------------------------------------
    x_p = jnp.zeros((n_pad_k, in_c), agg_dtype).at[:N].set(x.astype(agg_dtype))
    w_p = jnp.zeros((in_c, c_pad), agg_dtype).at[:, :out_c].set(
        weight.astype(agg_dtype))
    b_p = jnp.zeros((1, c_pad), jnp.float32).at[0, :out_c].set(
        bias.astype(jnp.float32))
    alpha2d = jnp.asarray(alpha, jnp.float32).reshape(1, 1)

    # ---- kernel 1: XW = X @ W (row-tiled, lane-dense output) ----------------
    tmx = math.gcd(tk, 1024)   # multiple of 128, divides tk and hence n_pad_k
    xw = pl.pallas_call(
        _xw_kernel,
        out_shape=jax.ShapeDtypeStruct((n_pad_k, c_pad), agg_dtype),
        grid=(n_pad_k // tmx,),
        in_specs=[
            pl.BlockSpec((tmx, in_c), lambda i: (i, 0)),     # X row tile
            pl.BlockSpec((in_c, c_pad), lambda i: (0, 0)),   # W (resident)
        ],
        out_specs=pl.BlockSpec((tmx, c_pad), lambda i: (i, 0)),
        compiler_params=pltpu.CompilerParams(
            dimension_semantics=("parallel",)),
    )(x_p, w_p)

    # ---- kernel 2: tiled aggregation  A_norm @ XW + bias, fused PReLU -------
    a_item = jnp.dtype(agg_dtype).itemsize
    xw_bytes = n_pad_k * c_pad * a_item
    xw_resident = xw_bytes <= xw_resident_bytes   # keep small for v7x's 64 MiB VMEM

    if xw_resident:
        xw_spec = pl.BlockSpec((n_pad_k, c_pad), lambda i, k: (0, 0))
        xw_read_bytes = xw_bytes                           # fetched once
    else:
        xw_spec = pl.BlockSpec((tk, c_pad), lambda i, k: (k, 0))
        xw_read_bytes = (n_pad_m // tm) * xw_bytes         # re-streamed per row tile

    cost = pl.CostEstimate(
        flops=2 * n_pad_m * n_pad_k * c_pad,
        transcendentals=0,
        bytes_accessed=(n_pad_m * n_pad_k * a_item         # A stream
                        + xw_read_bytes                    # XW
                        + c_pad * 4                        # bias row
                        + n_pad_m * c_pad * 4),            # output
    )

    kernel = functools.partial(_gcn_agg_kernel, tk=tk, xw_resident=xw_resident)
    out_p = pl.pallas_call(
        kernel,
        out_shape=jax.ShapeDtypeStruct((n_pad_m, c_pad), jnp.float32),
        grid=(n_pad_m // tm, n_pad_k // tk),
        in_specs=[
            pl.BlockSpec((tm, tk), lambda i, k: (i, k)),          # A tile
            xw_spec,                                              # XW (stream/resident)
            pl.BlockSpec((1, c_pad), lambda i, k: (0, 0)),        # bias row (resident)
            pl.BlockSpec(memory_space=pltpu.MemorySpace.SMEM),    # alpha scalar
        ],
        # Output block resident across k -> acts as the f32 accumulator.
        out_specs=pl.BlockSpec((tm, c_pad), lambda i, k: (i, 0)),
        compiler_params=pltpu.CompilerParams(
            dimension_semantics=("parallel", "arbitrary"),
            vmem_limit_bytes=48 * 1024 * 1024,
        ),
        cost_estimate=cost,
    )(a_norm, xw, b_p, alpha2d)

    # Padded rows contain PReLU(bias) garbage; slice them off.
    return out_p[:N, :out_c]


# ---------------------------------------------------------------------------
# Demo
# ---------------------------------------------------------------------------
if __name__ == "__main__":
    key = jax.random.PRNGKey(0)
    k_x, k_w, k_e = jax.random.split(key, 3)

    N = 16      # number of graph nodes
    in_c = 8    # input feature channels
    out_c = 16  # output feature channels
    E = 32      # number of directed edges

    # deterministic node features
    x = jax.random.normal(k_x, (N, in_c), dtype=jnp.float32)

    # deterministic edge_index: a ring plus some random edges
    ring_src = jnp.arange(N, dtype=jnp.int32)
    ring_dst = (ring_src + 1) % N
    rand_edges = jax.random.randint(k_e, (2, E - N), 0, N, dtype=jnp.int32)
    edge_index = jnp.concatenate(
        [jnp.stack([ring_src, ring_dst]), rand_edges], axis=1
    )

    # deterministic parameters (GCNConv weight [in_c, out_c], bias zeros;
    # PReLU single alpha = 0.25, matching nn.PReLU() default init)
    scale = (6.0 / (in_c + out_c)) ** 0.5
    weight = jax.random.uniform(k_w, (in_c, out_c), jnp.float32, -scale, scale)
    bias = jnp.zeros((out_c,), jnp.float32)
    alpha = jnp.float32(0.25)

    # default fast path (bf16 operands, f32 accumulation)
    out = gcn_text_forward(x, edge_index, weight, bias, alpha)
    jax.block_until_ready(out)
    assert out.shape == (N, out_c) and out.dtype == jnp.float32

    # f32-parity mode checked against a pure-JAX reference
    out_f32 = gcn_text_forward(x, edge_index, weight, bias, alpha,
                               agg_dtype=jnp.float32)
    src_r, dst_r = edge_index[0], edge_index[1]
    keep_r = (src_r != dst_r).astype(jnp.float32)
    loop_r = jnp.arange(N, dtype=jnp.int32)
    s_all = jnp.concatenate([src_r, loop_r])
    d_all = jnp.concatenate([dst_r, loop_r])
    w_all = jnp.concatenate([keep_r, jnp.ones((N,), jnp.float32)])
    deg_r = jnp.zeros((N,), jnp.float32).at[d_all].add(w_all)
    dinv_r = jnp.where(deg_r > 0, jax.lax.rsqrt(deg_r), 0.0)
    vals_r = w_all * dinv_r[s_all] * dinv_r[d_all]
    a_ref = jnp.zeros((N, N), jnp.float32).at[d_all, s_all].add(vals_r)
    hp = jax.lax.Precision.HIGHEST
    h_ref = jnp.dot(a_ref, jnp.dot(x, weight, precision=hp), precision=hp) + bias
    ref = jnp.where(h_ref > 0, h_ref, alpha * h_ref)
    assert jnp.allclose(out_f32, ref, atol=2e-3, rtol=2e-3)

    print("KERNEL_OK")
</pallas_src>

<mosaic_0001>
module attributes {stable_mosaic.version = 11 : i64} {
  func.func @_xw_kernel(%arg0: i32, %arg1: memref<128x8xbf16, #tpu.memory_space<vmem>>, %arg2: memref<8x128xbf16, #tpu.memory_space<vmem>>, %arg3: memref<128x128xbf16, #tpu.memory_space<vmem>>) attributes {dimension_semantics = [#tpu.dimension_semantics<parallel>], iteration_bounds = array<i64: 1>, scalar_prefetch = 0 : i64, scratch_operands = 0 : i64, tpu.core_type = #tpu.core_type<tc>, window_params = [{transform_indices = @transform_0, window_bounds = array<i64: 128, 8>}, {pipeline_mode = #tpu.pipeline_mode<synchronous>, transform_indices = @transform_1, window_bounds = array<i64: 8, 128>}, {transform_indices = @transform_2, window_bounds = array<i64: 128, 128>}]} {
    %c0 = arith.constant 0 : index
    %c0_0 = arith.constant 0 : index
    %0 = vector.load %arg1[%c0, %c0_0] : memref<128x8xbf16, #tpu.memory_space<vmem>>, vector<128x8xbf16>
    %c0_1 = arith.constant 0 : index
    %c0_2 = arith.constant 0 : index
    %1 = vector.load %arg2[%c0_1, %c0_2] : memref<8x128xbf16, #tpu.memory_space<vmem>>, vector<8x128xbf16>
    %cst = arith.constant dense<0.000000e+00> : vector<128x128xf32>
    %2 = tpu.matmul %0, %1, %cst {dimension_numbers = #tpu.dot_dimension_numbers<[1], [0], [0], [1], [0, 0, 1, 1], [], []>} : vector<128x8xbf16>, vector<8x128xbf16>, vector<128x128xf32> -> vector<128x128xf32>
    %3 = arith.truncf %2 : vector<128x128xf32> to vector<128x128xbf16>
    %c0_3 = arith.constant 0 : index
    %c0_4 = arith.constant 0 : index
    %4 = vector.load %arg3[%c0_3, %c0_4] : memref<128x128xbf16, #tpu.memory_space<vmem>>, vector<128x128xbf16>
    tpu.vector_store %arg3[%c0_3, %c0_4], %3 {strides = array<i32>} : memref<128x128xbf16, #tpu.memory_space<vmem>>, vector<128x128xbf16>,
    return
  }
  func.func @transform_0(%arg0: i32) -> (i32, i32) {
    %c0_i32 = arith.constant 0 : i32
    %c0_i32_0 = arith.constant 0 : i32
    return %arg0, %c0_i32 : i32, i32
  }
  func.func @transform_1(%arg0: i32) -> (i32, i32) {
    %c0_i32 = arith.constant 0 : i32
    %c0_i32_0 = arith.constant 0 : i32
    %c0_i32_1 = arith.constant 0 : i32
    return %c0_i32, %c0_i32_0 : i32, i32
  }
  func.func @transform_2(%arg0: i32) -> (i32, i32) {
    %c0_i32 = arith.constant 0 : i32
    %c0_i32_0 = arith.constant 0 : i32
    return %arg0, %c0_i32 : i32, i32
  }
}

</mosaic_0001>

<bundles_post_ra>
// kernel: tpu_custom_call.1
= control target key start
LH: loop header
LB: loop body
LE: loop exit
PB: predicated region body
PF: predicated region fallthrough
CT: control target
= control target key end

     0   :  { %vm95_vm0 = vcmask 1043456   ;;  %vm70_vm1 = vcmask 64512   ;;  %s518_s0 = inlined_call_operand.vmem [shape: bf16[128,8], index: 0, kind: input, shape index: {}]   ;;  %s519_s1 = inlined_call_operand.vmem [shape: bf16[8,128], index: 1, kind: input, shape index: {}]   ;;  %s520_s2 = inlined_call_operand.hbm [shape: bf16[128,128], index: 2, kind: output, shape index: {}]  }
   0x1   :  { %v29_v0 = vld [vmem:[%s519_s1] sm:$0xf]  ;;  %v423_v4 = vld [vmem:[%s518_s0 + $0x8] sm:$0xff]   ;;  %v425_v6 = vld [vmem:[%s518_s0 + $0x10] sm:$0xff]  }
   0x2   :  { %v421_v1 = vld [vmem:[%s518_s0] sm:$0xff]   ;;  %416 = vmatprep.subr.msk.bf16.mxu0 %vm95_vm0, %v29_v0  ;;  %417 = vmatprep.subr.msk.bf16.mxu1 %vm95_vm0, %v29_v0  ;;  %v97_v2 = vsel %vm95_vm0, %v29_v0, 0  ;;  %v424_v5 = vld [vmem:[%s518_s0 + $0x28] sm:$0xff]   ;;  %v426_v7 = vld [vmem:[%s518_s0 + $0x30] sm:$0xff]  }
   0x3   :  { %397 = vmatpush3.bf16.msra.mxu0 %v97_v2  ;;  %415 = vmatpush3.bf16.msra.mxu1 %v97_v2  ;;  %v422_v3 = vld [vmem:[%s518_s0 + $0x20] sm:$0xff]  }
   0x4   :  { %398 = vmatprep.mubr.msk.bf16.mxu0 %vm70_vm1, %v421_v1  ;;  %406 = vmatprep.mubr.msk.bf16.mxu1 %vm70_vm1, %v422_v3 }
   0x6   :  { %399 = vmatmul.mubr.msk.bf16.vlgmr.msra.gmra.mrb[0].mxu0 %vm70_vm1, %v423_v4  ;;  %407 = vmatmul.mubr.msk.bf16.vlgmr.msra.gmra.mrb[0].mxu1 %vm70_vm1, %v424_v5 }
   0x7   :  { %402 = vmatprep.mubr.msk.bf16.mxu0 %vm70_vm1, %v425_v6  ;;  %410 = vmatprep.mubr.msk.bf16.mxu1 %vm70_vm1, %v426_v7 }
   0x8   :  { %7 = vsyncpa [#allocation3], 0  ;;  %v427_v8 = vld [vmem:[%s518_s0 + $0x18] sm:$0xff]  }
   0x9   :  { %v428_v9 = vld [vmem:[%s518_s0 + $0x38] sm:$0xff]   ;;  %s453_s0 = smov [#allocation2]  }
   0xa   :  { %s281_s26 = sshll.u32 %s453_s0, 4  ;;  %s282_s26 = int_to_ptr.vmem [resolvable:$true] %s281_s26 }
   0xb   :  { %s429_s27 = scalar_lea.vmem %s282_s26, 1024  ;;  %p434_p1 = scmp.lt.s32.totalorder %s282_s26, %s282_s26 }
   0xc   :  { %p430_p0 = scmp.ne.s32.totalorder %s282_s26, %s429_s27  ;;  %p435_p2 = scmp.lt.s32.totalorder %s429_s27, %s429_s27 }
   0xe   :  { %403 = vmatmul.mubr.msk.bf16.gmra.mrb[4].mxu0 %vm70_vm1, %v427_v8  ;;  %411 = vmatmul.mubr.msk.bf16.gmra.mrb[4].mxu1 %vm70_vm1, %v428_v9  ;;  %p436_p3 = por %p435_p2, %p434_p1 }
  0x10   :  { %p437_p4 = pnand %p436_p3, %p430_p0 }
  0xd9   :  { %v400_v10 = vpop.f32.mrb[0].mxu0  ;;  %v408_v11 = vpop.f32.mrb[0].mxu1 }
  0xda   :  { %v133_v12 = vpop.f32.mrb[1].mxu0  ;;  %v165_v13 = vpop.f32.mrb[1].mxu1 }
  0xdb   :  { %v401_v14 = vpop.f32.mrb[2].mxu0  ;;  %v409_v16 = vpop.f32.mrb[2].mxu1 }
  0xdc   :  { %v348_v15 = vpack.c.bf16 %v401_v14, %v400_v10  ;;  %v136_v17 = vpop.f32.mrb[3].mxu0  ;;  %v368_v18 = vpack.c.bf16 %v409_v16, %v408_v11  ;;  %v168_v20 = vpop.f32.mrb[3].mxu1 }
  0xdd   :  { %v343_v19 = vpack.c.bf16 %v136_v17, %v133_v12  ;;  %v363_v21 = vpack.c.bf16 %v168_v20, %v165_v13 }
  0xde   :  { %380 = vst [vmem:[#allocation2 + $0x8] sm:$0xff] %v348_v15   ;;  %384 = vst [vmem:[#allocation2 + $0x28] sm:$0xff] %v368_v18  }
  0xdf   :  { %344 = vst [vmem:[#allocation2] sm:$0xff] %v343_v19   ;;  %383 = vst [vmem:[#allocation2 + $0x20] sm:$0xff] %v363_v21  }
  0xe1   :  { %v404_v22 = vpop.f32.mrb[4].mxu0  ;;  %v412_v23 = vpop.f32.mrb[4].mxu1 }
  0xe2   :  { %v149_v24 = vpop.f32.mrb[5].mxu0  ;;  %v181_v25 = vpop.f32.mrb[5].mxu1 }
  0xe3   :  { %v405_v26 = vpop.f32.mrb[6].mxu0  ;;  %v413_v28 = vpop.f32.mrb[6].mxu1 }
  0xe4   :  { %v358_v27 = vpack.c.bf16 %v405_v26, %v404_v22  ;;  %v152_v29 = vpop.f32.mrb[7].mxu0  ;;  %v378_v30 = vpack.c.bf16 %v413_v28, %v412_v23  ;;  %v184_v32 = vpop.f32.mrb[7].mxu1 }
  0xe5   :  { %v353_v31 = vpack.c.bf16 %v152_v29, %v149_v24  ;;  %v373_v33 = vpack.c.bf16 %v184_v32, %v181_v25 }
  0xe6   :  { %382 = vst [vmem:[#allocation2 + $0x18] sm:$0xff] %v358_v27   ;;  %386 = vst [vmem:[#allocation2 + $0x38] sm:$0xff] %v378_v30  }
  0xe7   :  { %381 = vst [vmem:[#allocation2 + $0x10] sm:$0xff] %v353_v31   ;;  %385 = vst [vmem:[#allocation2 + $0x30] sm:$0xff] %v373_v33  }
  0xe8   :  { %440 = shalt.err (!%p437_p4)
}
  0xe9   :  { %s441_s30 = scalar_lea.hbm %s520_s2, 1024 }
  0xea   :  { %p442_p5 = scmp.ne.s32.totalorder %s520_s2, %s441_s30  ;;  %p445_p6 = scmp.lt.u32.totalorder %s441_s30, %s520_s2 }
  0xec   :  { %p447_p7 = pnand %p445_p6, %p442_p5 }
  0xee   :  { %450 = shalt.err (!%p447_p7)
}
  0xef   :  { %s454_s7 = smov 64   ;;  %s455_s8 = smov 4  }
  0xf0   :  { %287 = dma.vmem_to_hbm [thread:$0]  %s282_s26, 1024, %s520_s2, [#allocation3], %s454_s7, %s454_s7, %s455_s8  }
  0xf1   :  { %451 = dma.done.wait [#allocation3], 1024  }
  0xf2   :  { %452 = vsyncadd [#allocation3], 4294966272 }
  0xf3   :  { %291 = vsyncpa [#allocation3], 1 }

</bundles_post_ra>
